<compile_context>
chip_gen: v5e
topology: v5e:2x2
jax: 0.10.0
libtpu: 0.0.40
codegen_flags: <defaults>
</compile_context>

<pallas_src>
import functools

import jax
import jax.numpy as jnp
from jax.experimental import pallas as pl
from jax.experimental.pallas import tpu as pltpu

LANE = 128  # lane-dense head-output width (pad O -> 128)


def basic_rnn_kernel(x_ref, w_ref, b_ref, wo_ref, bo_ref, y_ref, *, B, T):
    """Whole forward pass in one kernel invocation (no grid).

    x_ref:  (T*B, I)    bf16  time-major input rows (row = t*B + b)
    w_ref:  (I+H, H)    bf16  [W_ih^T ; W_hh^T] packed row-wise
    b_ref:  (1, H)      f32   b_ih + b_hh
    wo_ref: (H, LANE)   bf16  W_o^T zero-padded to 128 lanes
    bo_ref: (1, LANE)   f32   b_o zero-padded to 128 lanes
    y_ref:  (T*B, LANE) f32   head output (lane-dense), time-major rows
    """
    I = x_ref.shape[1]

    wih = w_ref[:I, :]                        # (I, H) bf16
    whh = w_ref[I:, :]                        # (H, H) bf16

    # ---- Hoisted input projection + bias (off the serial critical path) ----
    pre_all = (jnp.dot(x_ref[...], wih, preferred_element_type=jnp.float32)
               + b_ref[...])                  # (T*B, H) f32, one broadcast add

    # ---- Serial recurrence: only the h-dependent work remains ----
    # T is a tiny static constant -> fully unrolled; only `h` is live across
    # iterations, hidden states are kept as register values (no VMEM scratch).
    # TODO(synk): for large T/B, chunk the time axis over a grid, shard
    # independent batch rows over v7x's 2 TensorCores (parallel batch axis),
    # and keep W_hh resident in the MXU via pltpu.matmul_push_rhs/acc_lhs.
    H = w_ref.shape[1]
    h = jnp.zeros((B, H), jnp.float32)
    hs = []
    for t in range(T):
        pre = (pre_all[t * B:(t + 1) * B, :]
               + jnp.dot(h.astype(jnp.bfloat16), whh,
                         preferred_element_type=jnp.float32))
        h = jnp.tanh(pre)                     # f32 activation path (v5e-safe)
        hs.append(h)

    # ---- Head, hoisted out of the recurrence ----
    # One (T*B, H) @ (H, 128) matmul and one unmasked lane-dense store.
    hs_all = jnp.concatenate(hs, axis=0).astype(jnp.bfloat16)   # (T*B, H)
    y_ref[...] = (jnp.dot(hs_all, wo_ref[...],
                          preferred_element_type=jnp.float32)
                  + bo_ref[...])


def basic_rnn_forward(x, params):
    """x: (B, T, I) float32. Mirrors BasicRNN.forward (rnn -> squeeze -> i2o)."""
    B, T, I = x.shape
    w_ih, w_hh, b_ih, b_hh, w_o, b_o = (
        params["w_ih"], params["w_hh"], params["b_ih"],
        params["b_hh"], params["w_o"], params["b_o"])
    H = w_ih.shape[0]
    O = w_o.shape[0]

    # Time-major bf16 input rows: row index = t*B + b.
    x_tb = jnp.transpose(x, (1, 0, 2)).reshape(T * B, I).astype(jnp.bfloat16)
    # Packed recurrence weights [W_ih^T ; W_hh^T] -> (I+H, H) bf16.
    w_cat = jnp.concatenate([w_ih.T, w_hh.T], axis=0).astype(jnp.bfloat16)
    # Combined bias as (1, H); the broadcast over rows happens once in-kernel.
    b = (b_ih + b_hh).astype(jnp.float32).reshape(1, H)
    # Lane-dense head weights: zero-pad the output dim O -> 128.
    wo_pad = jnp.zeros((H, LANE), jnp.bfloat16).at[:, :O].set(
        w_o.T.astype(jnp.bfloat16))
    bo_pad = jnp.zeros((1, LANE), jnp.float32).at[:, :O].set(
        b_o.astype(jnp.float32))

    # Single invocation, no grid: everything (a few KiB) is resident in VMEM.
    y_tb = pl.pallas_call(
        functools.partial(basic_rnn_kernel, B=B, T=T),
        out_shape=jax.ShapeDtypeStruct((T * B, LANE), jnp.float32),
        in_specs=[pl.BlockSpec(memory_space=pltpu.MemorySpace.VMEM)] * 5,
        out_specs=pl.BlockSpec(memory_space=pltpu.MemorySpace.VMEM),
    )(x_tb, w_cat, b, wo_pad, bo_pad)

    # (T*B, 128) -> slice valid lanes -> (B, T, O); cheap XLA ops on a tiny
    # tensor outside the kernel.
    y = jnp.transpose(y_tb[:, :O].reshape(T, B, O), (1, 0, 2))
    # torch-style .squeeze() of the RNN output: only the leading (B, T) dims
    # can be size-1 there, so squeeze those (never the head's O dim).
    squeeze_axes = tuple(i for i, d in enumerate((B, T)) if d == 1)
    return jnp.squeeze(y, axis=squeeze_axes) if squeeze_axes else y


def init_params(key, input_size, hidden_size, output_size):
    """Deterministic init mirroring PyTorch's U(-1/sqrt(H), 1/sqrt(H))."""
    k = jax.random.split(key, 6)
    bound = 1.0 / jnp.sqrt(hidden_size)
    u = lambda kk, shape: jax.random.uniform(
        kk, shape, jnp.float32, minval=-bound, maxval=bound)
    return {
        "w_ih": u(k[0], (hidden_size, input_size)),
        "w_hh": u(k[1], (hidden_size, hidden_size)),
        "b_ih": u(k[2], (hidden_size,)),
        "b_hh": u(k[3], (hidden_size,)),
        "w_o":  u(k[4], (output_size, hidden_size)),
        "b_o":  u(k[5], (output_size,)),
    }


def reference_forward(x, params):
    """Pure-JAX mirror of the PyTorch forward.

    Matmul operands are rounded to bf16 exactly as the kernel feeds the MXU
    (f32 accumulation everywhere), so remaining differences are only
    accumulation order / tanh implementation.  NOTE: the bf16 rounding of h
    before the W_hh matmul is an intentional accuracy trade-off vs. a pure-f32
    nn.RNN; drift is negligible at T=8 but compounds for long sequences.
    """
    B, T, _ = x.shape
    H = params["w_ih"].shape[0]
    bf = lambda a: a.astype(jnp.bfloat16)
    wih_t = bf(params["w_ih"].T)
    whh_t = bf(params["w_hh"].T)
    wo_t = bf(params["w_o"].T)
    b = (params["b_ih"] + params["b_hh"]).astype(jnp.float32)
    h = jnp.zeros((B, H), jnp.float32)
    hs = []
    for t in range(T):
        pre = (jnp.dot(bf(x[:, t, :]), wih_t, preferred_element_type=jnp.float32)
               + b
               + jnp.dot(bf(h), whh_t, preferred_element_type=jnp.float32))
        h = jnp.tanh(pre)
        hs.append(h)
    hs = jnp.stack(hs, axis=1)                                 # (B, T, H)
    y = (jnp.dot(bf(hs), wo_t, preferred_element_type=jnp.float32)
         + params["b_o"])                                      # (B, T, O)
    squeeze_axes = tuple(i for i, d in enumerate((B, T)) if d == 1)
    return jnp.squeeze(y, axis=squeeze_axes) if squeeze_axes else y


if __name__ == "__main__":
    # Small shapes consistent with the module:
    # max_word_len (RNN input size) = 16, hidden = 32, output = 10,
    # batch = 2, seq = 8.
    B, T, I, H, O = 2, 8, 16, 32, 10

    key = jax.random.PRNGKey(0)
    kx, kp = jax.random.split(key)
    x = jax.random.normal(kx, (B, T, I), jnp.float32)
    params = init_params(kp, I, H, O)

    out = jax.block_until_ready(basic_rnn_forward(x, params))

    ref = reference_forward(x, params)
    assert out.shape == ref.shape, (out.shape, ref.shape)
    # Tolerance absorbs bf16 matmul operands (reference uses identically
    # rounded operands) plus accumulation-order / tanh-implementation deltas.
    assert jnp.allclose(out, ref, atol=2e-3, rtol=2e-3)

    print("KERNEL_OK")
</pallas_src>

<mosaic_0001>
module attributes {stable_mosaic.version = 11 : i64} {
  func.func @basic_rnn_kernel(%arg0: memref<16x16xbf16, #tpu.memory_space<vmem>>, %arg1: memref<48x32xbf16, #tpu.memory_space<vmem>>, %arg2: memref<1x32xf32, #tpu.memory_space<vmem>>, %arg3: memref<32x128xbf16, #tpu.memory_space<vmem>>, %arg4: memref<1x128xf32, #tpu.memory_space<vmem>>, %arg5: memref<16x128xf32, #tpu.memory_space<vmem>>) attributes {dimension_semantics = [], scalar_prefetch = 0 : i64, scratch_operands = 0 : i64, tpu.core_type = #tpu.core_type<tc>} {
    %c0 = arith.constant 0 : index
    %c0_0 = arith.constant 0 : index
    %0 = vector.load %arg1[%c0, %c0_0] : memref<48x32xbf16, #tpu.memory_space<vmem>>, vector<16x32xbf16>
    %c16 = arith.constant 16 : index
    %c0_1 = arith.constant 0 : index
    %1 = vector.load %arg1[%c16, %c0_1] : memref<48x32xbf16, #tpu.memory_space<vmem>>, vector<32x32xbf16>
    %c0_2 = arith.constant 0 : index
    %c0_3 = arith.constant 0 : index
    %2 = vector.load %arg0[%c0_2, %c0_3] : memref<16x16xbf16, #tpu.memory_space<vmem>>, vector<16x16xbf16>
    %cst = arith.constant dense<0.000000e+00> : vector<16x32xf32>
    %3 = tpu.matmul %2, %0, %cst {dimension_numbers = #tpu.dot_dimension_numbers<[1], [0], [0], [1], [0, 0, 1, 1], [], []>} : vector<16x16xbf16>, vector<16x32xbf16>, vector<16x32xf32> -> vector<16x32xf32>
    %c0_4 = arith.constant 0 : index
    %c0_5 = arith.constant 0 : index
    %4 = vector.load %arg2[%c0_4, %c0_5] : memref<1x32xf32, #tpu.memory_space<vmem>>, vector<1x32xf32>
    %5 = vector.broadcast %4 : vector<1x32xf32> to vector<16x32xf32>
    %6 = arith.addf %3, %5 : vector<16x32xf32>
    %cst_6 = arith.constant 0.000000e+00 : f32
    %7 = vector.broadcast %cst_6 : f32 to vector<2x32xf32>
    %8 = vector.extract_strided_slice %6 {offsets = [0, 0], sizes = [2, 32], strides = [1, 1]} : vector<16x32xf32> to vector<2x32xf32>
    %9 = arith.truncf %7 : vector<2x32xf32> to vector<2x32xbf16>
    %cst_7 = arith.constant dense<0.000000e+00> : vector<2x32xf32>
    %10 = tpu.matmul %9, %1, %cst_7 {dimension_numbers = #tpu.dot_dimension_numbers<[1], [0], [0], [1], [0, 0, 1, 1], [], []>} : vector<2x32xbf16>, vector<32x32xbf16>, vector<2x32xf32> -> vector<2x32xf32>
    %11 = arith.addf %8, %10 : vector<2x32xf32>
    %12 = math.tanh %11 : vector<2x32xf32>
    %13 = vector.extract_strided_slice %6 {offsets = [2, 0], sizes = [2, 32], strides = [1, 1]} : vector<16x32xf32> to vector<2x32xf32>
    %14 = arith.truncf %12 : vector<2x32xf32> to vector<2x32xbf16>
    %cst_8 = arith.constant dense<0.000000e+00> : vector<2x32xf32>
    %15 = tpu.matmul %14, %1, %cst_8 {dimension_numbers = #tpu.dot_dimension_numbers<[1], [0], [0], [1], [0, 0, 1, 1], [], []>} : vector<2x32xbf16>, vector<32x32xbf16>, vector<2x32xf32> -> vector<2x32xf32>
    %16 = arith.addf %13, %15 : vector<2x32xf32>
    %17 = math.tanh %16 : vector<2x32xf32>
    %18 = vector.extract_strided_slice %6 {offsets = [4, 0], sizes = [2, 32], strides = [1, 1]} : vector<16x32xf32> to vector<2x32xf32>
    %19 = arith.truncf %17 : vector<2x32xf32> to vector<2x32xbf16>
    %cst_9 = arith.constant dense<0.000000e+00> : vector<2x32xf32>
    %20 = tpu.matmul %19, %1, %cst_9 {dimension_numbers = #tpu.dot_dimension_numbers<[1], [0], [0], [1], [0, 0, 1, 1], [], []>} : vector<2x32xbf16>, vector<32x32xbf16>, vector<2x32xf32> -> vector<2x32xf32>
    %21 = arith.addf %18, %20 : vector<2x32xf32>
    %22 = math.tanh %21 : vector<2x32xf32>
    %23 = vector.extract_strided_slice %6 {offsets = [6, 0], sizes = [2, 32], strides = [1, 1]} : vector<16x32xf32> to vector<2x32xf32>
    %24 = arith.truncf %22 : vector<2x32xf32> to vector<2x32xbf16>
    %cst_10 = arith.constant dense<0.000000e+00> : vector<2x32xf32>
    %25 = tpu.matmul %24, %1, %cst_10 {dimension_numbers = #tpu.dot_dimension_numbers<[1], [0], [0], [1], [0, 0, 1, 1], [], []>} : vector<2x32xbf16>, vector<32x32xbf16>, vector<2x32xf32> -> vector<2x32xf32>
    %26 = arith.addf %23, %25 : vector<2x32xf32>
    %27 = math.tanh %26 : vector<2x32xf32>
    %28 = vector.extract_strided_slice %6 {offsets = [8, 0], sizes = [2, 32], strides = [1, 1]} : vector<16x32xf32> to vector<2x32xf32>
    %29 = arith.truncf %27 : vector<2x32xf32> to vector<2x32xbf16>
    %cst_11 = arith.constant dense<0.000000e+00> : vector<2x32xf32>
    %30 = tpu.matmul %29, %1, %cst_11 {dimension_numbers = #tpu.dot_dimension_numbers<[1], [0], [0], [1], [0, 0, 1, 1], [], []>} : vector<2x32xbf16>, vector<32x32xbf16>, vector<2x32xf32> -> vector<2x32xf32>
    %31 = arith.addf %28, %30 : vector<2x32xf32>
    %32 = math.tanh %31 : vector<2x32xf32>
    %33 = vector.extract_strided_slice %6 {offsets = [10, 0], sizes = [2, 32], strides = [1, 1]} : vector<16x32xf32> to vector<2x32xf32>
    %34 = arith.truncf %32 : vector<2x32xf32> to vector<2x32xbf16>
    %cst_12 = arith.constant dense<0.000000e+00> : vector<2x32xf32>
    %35 = tpu.matmul %34, %1, %cst_12 {dimension_numbers = #tpu.dot_dimension_numbers<[1], [0], [0], [1], [0, 0, 1, 1], [], []>} : vector<2x32xbf16>, vector<32x32xbf16>, vector<2x32xf32> -> vector<2x32xf32>
    %36 = arith.addf %33, %35 : vector<2x32xf32>
    %37 = math.tanh %36 : vector<2x32xf32>
    %38 = vector.extract_strided_slice %6 {offsets = [12, 0], sizes = [2, 32], strides = [1, 1]} : vector<16x32xf32> to vector<2x32xf32>
    %39 = arith.truncf %37 : vector<2x32xf32> to vector<2x32xbf16>
    %cst_13 = arith.constant dense<0.000000e+00> : vector<2x32xf32>
    %40 = tpu.matmul %39, %1, %cst_13 {dimension_numbers = #tpu.dot_dimension_numbers<[1], [0], [0], [1], [0, 0, 1, 1], [], []>} : vector<2x32xbf16>, vector<32x32xbf16>, vector<2x32xf32> -> vector<2x32xf32>
    %41 = arith.addf %38, %40 : vector<2x32xf32>
    %42 = math.tanh %41 : vector<2x32xf32>
    %43 = vector.extract_strided_slice %6 {offsets = [14, 0], sizes = [2, 32], strides = [1, 1]} : vector<16x32xf32> to vector<2x32xf32>
    %44 = arith.truncf %42 : vector<2x32xf32> to vector<2x32xbf16>
    %cst_14 = arith.constant dense<0.000000e+00> : vector<2x32xf32>
    %45 = tpu.matmul %44, %1, %cst_14 {dimension_numbers = #tpu.dot_dimension_numbers<[1], [0], [0], [1], [0, 0, 1, 1], [], []>} : vector<2x32xbf16>, vector<32x32xbf16>, vector<2x32xf32> -> vector<2x32xf32>
    %46 = arith.addf %43, %45 : vector<2x32xf32>
    %47 = math.tanh %46 : vector<2x32xf32>
    %48 = tpu.concatenate %12, %17, %22, %27, %32, %37, %42, %47 in 0 : vector<2x32xf32>, vector<2x32xf32>, vector<2x32xf32>, vector<2x32xf32>, vector<2x32xf32>, vector<2x32xf32>, vector<2x32xf32>, vector<2x32xf32> -> vector<16x32xf32>
    %49 = arith.truncf %48 : vector<16x32xf32> to vector<16x32xbf16>
    %c0_15 = arith.constant 0 : index
    %c0_16 = arith.constant 0 : index
    %50 = vector.load %arg3[%c0_15, %c0_16] : memref<32x128xbf16, #tpu.memory_space<vmem>>, vector<32x128xbf16>
    %cst_17 = arith.constant dense<0.000000e+00> : vector<16x128xf32>
    %51 = tpu.matmul %49, %50, %cst_17 {dimension_numbers = #tpu.dot_dimension_numbers<[1], [0], [0], [1], [0, 0, 1, 1], [], []>} : vector<16x32xbf16>, vector<32x128xbf16>, vector<16x128xf32> -> vector<16x128xf32>
    %c0_18 = arith.constant 0 : index
    %c0_19 = arith.constant 0 : index
    %52 = vector.load %arg4[%c0_18, %c0_19] : memref<1x128xf32, #tpu.memory_space<vmem>>, vector<1x128xf32>
    %53 = vector.broadcast %52 : vector<1x128xf32> to vector<16x128xf32>
    %54 = arith.addf %51, %53 : vector<16x128xf32>
    %c0_20 = arith.constant 0 : index
    %c0_21 = arith.constant 0 : index
    %55 = vector.load %arg5[%c0_20, %c0_21] : memref<16x128xf32, #tpu.memory_space<vmem>>, vector<16x128xf32>
    tpu.vector_store %arg5[%c0_20, %c0_21], %54 {strides = array<i32>} : memref<16x128xf32, #tpu.memory_space<vmem>>, vector<16x128xf32>,
    return
  }
}

</mosaic_0001>

<bundles_post_ra>
// kernel: tpu_custom_call.1
= control target key start
LH: loop header
LB: loop body
LE: loop exit
PB: predicated region body
PF: predicated region fallthrough
CT: control target
= control target key end

     0   :  { %vm45_vm0 = vcmask 130048   ;;  %s484_s0 = inlined_call_operand.vmem [shape: bf16[16,16], index: 0, kind: input, shape index: {}]   ;;  %s485_s1 = inlined_call_operand.vmem [shape: bf16[48,32], index: 1, kind: input, shape index: {}]   ;;  %s486_s2 = inlined_call_operand.vmem [shape: f32[1,32], index: 2, kind: input, shape index: {}]   ;;  %s487_s3 = inlined_call_operand.vmem [shape: bf16[32,128], index: 3, kind: input, shape index: {}]   ;;  %s488_s4 = inlined_call_operand.vmem [shape: f32[1,128], index: 4, kind: input, shape index: {}]   ;;  %s489_s5 = inlined_call_operand.hbm [shape: f32[16,128], index: 5, kind: output, shape index: {}]  }
   0x1   :  { %v355_v0 = vld [vmem:[%s485_s1] sm:$0xff]  ;;  %v357_v1 = vld [vmem:[%s485_s1 + $0x10] sm:$0xff]  ;;  %v356_v3 = vld [vmem:[%s485_s1 + $0x8] sm:$0xff] }
   0x2   :  { %v358_v2 = vld [vmem:[%s484_s0] sm:$0xff]  ;;  %56 = vmatpush.bf16.msra.mxu0 %v355_v0  ;;  %85 = vmatpush.bf16.msra.mxu1 %v357_v1 }
   0x3   :  { %10 = vsyncpa [#allocation3], 0  ;;  %104 = vmatpush.bf16.msra.mxu2 %v357_v1  ;;  %128 = vmatpush.bf16.msra.mxu3 %v357_v1  ;;  %v409_v4 = vmov 0   ;;  %v365_v5 = vld [vmem:[%s486_s2] ss:$0 sm:$0xff]  ;;  %vm75_vm1 = vcmask 261120  }
   0x4   :  { %vm255_vm2 = vcmask 1041408   ;;  %vm257_vm3 = vcmask 1043456   ;;  %vm259_vm4 = vcmask 1045504   ;;  %v360_v51 = vld [vmem:[%s487_s3 + $0x8] sm:$0xff]  ;;  %v359_v61 = vld [vmem:[%s487_s3] sm:$0xff]  ;;  %s410_s3 = smov [#allocation2]  }
   0x5   :  { %330 = vmatmul.msk.bf16.vlgmr.msra.gmra.mxu0 %vm45_vm0, %v358_v2  ;;  %s308_s6 = sshll.u32 %s410_s3, 4  ;;  %s310_s9 = sshll.u32 %s489_s5, 4  ;;  %s309_s6 = int_to_ptr.vmem [resolvable:$true] %s308_s6  ;;  %s311_s9 = int_to_ptr.hbm [resolvable:$true] %s310_s9 }
   0x6   :  { %152 = vmatpush.bf16.msrb.mxu0 %v357_v1  ;;  %86 = vmatpush.bf16.msra.mxu1 %v356_v3  ;;  %s411_s10 = smov 128   ;;  %s412_s11 = smov 8  }
   0x7   :  { %105 = vmatpush.bf16.msra.mxu2 %v356_v3  ;;  %129 = vmatpush.bf16.msra.mxu3 %v356_v3 }
   0x9   :  { %87 = vmatmul.bf16.vlgmr.msra.gmra.mxu1 %v409_v4 }
   0xa   :  { %153 = vmatpush.bf16.msrb.mxu0 %v356_v3  ;;  %176 = vmatpush.bf16.msrb.mxu1 %v357_v1 }
   0xb   :  { %195 = vmatpush.bf16.msrb.mxu2 %v357_v1  ;;  %219 = vmatpush.bf16.msrb.mxu3 %v357_v1 }
   0xe   :  { %243 = vmatpush.bf16.msra.mxu0 %v357_v1  ;;  %177 = vmatpush.bf16.msrb.mxu1 %v356_v3 }
   0xf   :  { %196 = vmatpush.bf16.msrb.mxu2 %v356_v3  ;;  %220 = vmatpush.bf16.msrb.mxu3 %v356_v3 }
  0x12   :  { %244 = vmatpush.bf16.msra.mxu0 %v356_v3  ;;  %294 = vmatpush.bf16.msra.mxu1 %v360_v51 }
  0x16   :  { %295 = vmatpush.bf16.msra.mxu1 %v359_v61 }
  0x82   :  { %v58_v6 = vpop.f32.mrf.mxu0 }
  0x83   :  { %v59_v7 = vadd.f32 %v365_v5, %v58_v6 }
  0x86   :  { %v88_v8 = vpop.f32.mrf.mxu1 }
  0x87   :  { %v92_v9 = vadd.f32 %v88_v8, %v59_v7 }
  0x89   :  { %367 = vtanh.f32 %v92_v9 }
  0x8a   :  { %v60_v29 = vpop.f32.mrf.mxu0 }
  0x8b   :  { %v61_v38 = vadd.f32 %v365_v5, %v60_v29  ;;  %v366_v5 = vld [vmem:[%s488_s4] ss:$0 sm:$0xff] }
  0x8e   :  { %v90_v10 = vpop.f32.mrf.mxu1 }
  0x8f   :  { %v368_v11 = vpop.eup %367 }
  0x90   :  { %v94_v12 = vpack.c.bf16 %v368_v11, %v368_v11 }
  0x92   :  { %339 = vmatmul.msk.bf16.vlgmr.msra.gmra.mxu2 %vm75_vm1, %v94_v12 }
 0x115   :  { %v107_v13 = vpop.f32.mrf.mxu2 }
 0x116   :  { %v112_v14 = vrot.slane %v107_v13, 6 }
 0x118   :  { %v114_v15 = vadd.f32 %v112_v14, %v59_v7 }
 0x11a   :  { %369 = vtanh.f32 %v114_v15 }
 0x11d   :  { %v109_v16 = vpop.f32.mrf.mxu2 }
 0x120   :  { %v370_v17 = vpop.eup %369 }
 0x121   :  { %v116_v18 = vpack.c.bf16 %v370_v17, %v370_v17  ;;  %v256_v25 = vsel %vm255_vm2, %v368_v11, %v370_v17 }
 0x123   :  { %v118_v19 = vrot.slane %v116_v18, 1 }
 0x125   :  { %340 = vmatmul.msk.bf16.vlgmr.msra.gmra.mxu3 %vm75_vm1, %v118_v19 }
 0x1a8   :  { %v131_v20 = vpop.f32.mrf.mxu3 }
 0x1a9   :  { %v136_v21 = vrot.slane %v131_v20, 4 }
 0x1ab   :  { %v138_v22 = vadd.f32 %v136_v21, %v59_v7 }
 0x1ad   :  { %371 = vtanh.f32 %v138_v22 }
 0x1b0   :  { %v133_v23 = vpop.f32.mrf.mxu3 }
 0x1b3   :  { %v372_v24 = vpop.eup %371 }
 0x1b4   :  { %v140_v26 = vpack.c.bf16 %v372_v24, %v372_v24  ;;  %v258_v27 = vsel %vm257_vm3, %v256_v25, %v372_v24 }
 0x1b6   :  { %v142_v28 = vrot.slane %v140_v26, 2 }
 0x1b8   :  { %341 = vmatmul.msk.bf16.vlgmr.msrb.gmra.mxu0 %vm75_vm1, %v142_v28 }
 0x235   :  { %v155_v30 = vpop.f32.mrf.mxu0 }
 0x236   :  { %v160_v31 = vrot.slane %v155_v30, 2 }
 0x238   :  { %v162_v32 = vadd.f32 %v160_v31, %v59_v7 }
 0x23a   :  { %373 = vtanh.f32 %v162_v32 }
 0x23d   :  { %v157_v33 = vpop.f32.mrf.mxu0 }
 0x240   :  { %v374_v34 = vpop.eup %373 }
 0x241   :  { %v164_v35 = vpack.c.bf16 %v374_v34, %v374_v34  ;;  %v260_v36 = vsel %vm259_vm4, %v258_v27, %v374_v34 }
 0x243   :  { %v166_v37 = vrot.slane %v164_v35, 3 }
 0x245   :  { %342 = vmatmul.msk.bf16.vlgmr.msrb.gmra.mxu1 %vm75_vm1, %v166_v37 }
 0x2c2   :  { %v179_v39 = vpop.f32.mrf.mxu1 }
 0x2c3   :  { %v183_v40 = vadd.f32 %v179_v39, %v61_v38 }
 0x2c5   :  { %375 = vtanh.f32 %v183_v40 }
 0x2ca   :  { %v181_v41 = vpop.f32.mrf.mxu1 }
 0x2cb   :  { %v376_v42 = vpop.eup %375 }
 0x2cc   :  { %v185_v43 = vpack.c.bf16 %v376_v42, %v376_v42 }
 0x2ce   :  { %343 = vmatmul.msk.bf16.vlgmr.msrb.gmra.mxu2 %vm75_vm1, %v185_v43 }
 0x351   :  { %v198_v44 = vpop.f32.mrf.mxu2 }
 0x352   :  { %v203_v45 = vrot.slane %v198_v44, 6 }
 0x354   :  { %v205_v46 = vadd.f32 %v203_v45, %v61_v38 }
 0x356   :  { %377 = vtanh.f32 %v205_v46 }
 0x359   :  { %v200_v47 = vpop.f32.mrf.mxu2 }
 0x35c   :  { %v378_v48 = vpop.eup %377 }
 0x35d   :  { %v207_v49 = vpack.c.bf16 %v378_v48, %v378_v48  ;;  %v261_v57 = vsel %vm255_vm2, %v376_v42, %v378_v48 }
 0x35f   :  { %v209_v50 = vrot.slane %v207_v49, 1 }
 0x361   :  { %344 = vmatmul.msk.bf16.vlgmr.msrb.gmra.mxu3 %vm75_vm1, %v209_v50 }
 0x3e4   :  { %v222_v52 = vpop.f32.mrf.mxu3 }
 0x3e5   :  { %v227_v53 = vrot.slane %v222_v52, 4 }
 0x3e7   :  { %v229_v54 = vadd.f32 %v227_v53, %v61_v38 }
 0x3e9   :  { %379 = vtanh.f32 %v229_v54 }
 0x3ec   :  { %v224_v55 = vpop.f32.mrf.mxu3 }
 0x3ef   :  { %v380_v56 = vpop.eup %379 }
 0x3f0   :  { %v231_v58 = vpack.c.bf16 %v380_v56, %v380_v56  ;;  %v262_v59 = vsel %vm257_vm3, %v261_v57, %v380_v56 }
 0x3f2   :  { %v233_v60 = vrot.slane %v231_v58, 2 }
 0x3f4   :  { %345 = vmatmul.msk.bf16.vlgmr.msra.gmra.mxu0 %vm75_vm1, %v233_v60 }
 0x471   :  { %v246_v62 = vpop.f32.mrf.mxu0 }
 0x472   :  { %v251_v63 = vrot.slane %v246_v62, 2 }
 0x474   :  { %v253_v0 = vadd.f32 %v251_v63, %v61_v38 }
 0x476   :  { %381 = vtanh.f32 %v253_v0 }
 0x479   :  { %v248_v1 = vpop.f32.mrf.mxu0 }
 0x47c   :  { %v382_v2 = vpop.eup %381 }
 0x47d   :  { %v263_v3 = vsel %vm259_vm4, %v262_v59, %v382_v2 }
 0x47e   :  { %v264_v4 = vpack.c.bf16 %v263_v3, %v260_v36 }
 0x480   :  { %354 = vmatmul.msk.bf16.vlgmr.msra.gmra.mxu1 %vm75_vm1, %v264_v4 }
 0x4fd   :  { %v297_v6 = vpop.f32.mrf.mxu1 }
 0x4fe   :  { %v298_v7 = vadd.f32 %v366_v5, %v297_v6 }
 0x500   :  { %302 = vst [vmem:[#allocation2] sm:$0xff] %v298_v7 }
 0x505   :  { %v299_v8 = vpop.f32.mrf.mxu1 }
 0x506   :  { %v300_v9 = vadd.f32 %v366_v5, %v299_v8 }
 0x508   :  { %303 = vst [vmem:[#allocation2 + $0x8] sm:$0xff] %v300_v9 }
 0x509   :  { %316 = dma.vmem_to_hbm [thread:$0]  %s309_s6, 256, %s311_s9, [#allocation3], %s411_s10, %s411_s10, %s412_s11  }
 0x50a   :  { %407 = dma.done.wait [#allocation3], 256  }
 0x50b   :  { %408 = vsyncadd [#allocation3], 4294967040 }
 0x50c   :  { %321 = vsyncpa [#allocation3], 1 }

</bundles_post_ra>
